<compile_context>
chip_gen: v7x
topology: tpu7x:2x2x1
jax: 0.10.0
libtpu: 0.0.40
codegen_flags: <defaults>
</compile_context>

<pallas_src>
import functools
import math

import numpy as np
import jax
import jax.numpy as jnp
from jax import lax
from jax.experimental import pallas as pl
from jax.experimental.pallas import tpu as pltpu


# ----------------------------------------------------------------------------
# In-kernel helpers (operate on values, traced inside the kernel)
# ----------------------------------------------------------------------------
def _fast_recip(x):
    # EUP approximate reciprocal + one Newton-Raphson refinement: keeps the divide off
    # the VALU slot while restoring ~f32 accuracy (error ~ seed_error^2).
    r = pl.reciprocal(x, approx=True)
    return r * (2.0 - x * r)


def _layer_norm(x, g, b, eps):
    # torch-style LayerNorm: unbiased std (ddof=1), divides by (std + eps).
    f = x.shape[-1]
    mean = jnp.mean(x, axis=-1, keepdims=True)
    var = jnp.sum((x - mean) ** 2, axis=-1, keepdims=True) * (1.0 / (f - 1))
    inv = _fast_recip(jnp.sqrt(var) + eps)
    return g * (x - mean) * inv + b


def _attention_heads(data, w_all, b_all, a_src, a_dst_mat, cnt, *, alpha, H, hid):
    """All-heads graph attention, fused.

    data      (N, F_in)       node features
    w_all     (F_in, H*hid)   all head projections fused into one lane-dense matmul
    b_all     (1, H*hid)
    a_src     (H, hid)        source attention vectors, 1/d_h pre-folded
    a_dst_mat (H, H*hid)      row h holds a_dst[h]/d_h in columns [h*hid, (h+1)*hid)
    cnt       (N, N) f32      dense edge multiplicities (duplicate edges summed)
    returns   list of H arrays of shape (N, hid)
    """
    # One MXU-shaped projection for all heads.
    h_all = jnp.dot(data, w_all, preferred_element_type=jnp.float32) + b_all     # (N, H*hid)

    # Destination scores for ALL heads with a single small matmul, already in row
    # (lane-major) orientation -> broadcasts directly to (N, N), no relayout needed.
    s_dst_all = lax.dot_general(a_dst_mat, h_all, (((1,), (1,)), ((), ())),
                                preferred_element_type=jnp.float32)              # (H, N)

    outs = []
    for hh in range(H):                     # H is tiny and static; unrolled at trace time
        h_h = h_all[:, hh * hid:(hh + 1) * hid]                                   # (N, hid)
        # Source score on the VPU/XLU (no rank-1 MXU dot inside the head loop).
        s_src = jnp.sum(h_h * a_src[hh:hh + 1, :], axis=-1, keepdims=True)        # (N, 1)
        logits = s_src + s_dst_all[hh:hh + 1, :]                                  # (N, N)
        # 1/d_h is folded into a_src/a_dst (leaky_relu is positively homogeneous).
        lrelu = jnp.where(logits > 0, logits, alpha * logits)
        e = jnp.exp(lrelu)
        A = cnt * e                                                               # (N, N)
        rowsum = jnp.sum(A, axis=-1, keepdims=True)                               # (N, 1)
        is_zero = rowsum == 0.0
        num = jnp.dot(A, h_h, preferred_element_type=jnp.float32)                 # (N, hid)
        inv = _fast_recip(jnp.where(is_zero, 1.0, rowsum))
        # Zero rows of A contribute 0 to A@h, so torch's self-loop patch reduces to "take h".
        outs.append(jnp.where(is_zero, h_h, num * inv))
    return outs


# ----------------------------------------------------------------------------
# Fused kernels (attention + FFN epilogue in one pallas_call)
# ----------------------------------------------------------------------------
def _graph_layer_concat_kernel(data_ref, wall_ref, ball_ref, asrc_ref, adstm_ref,
                               cnt_ref, g_ref, beta_ref, out_ref,
                               *, alpha, H, hid, eps):
    outs = _attention_heads(data_ref[...], wall_ref[...], ball_ref[...],
                            asrc_ref[...], adstm_ref[...],
                            cnt_ref[...].astype(jnp.float32),
                            alpha=alpha, H=H, hid=hid)
    hp = outs[0] if len(outs) == 1 else jnp.concatenate(outs, axis=-1)            # (N, H*hid)
    # Dropout -> LayerNorm -> ELU  (Dropout is eval-mode identity)
    y = _layer_norm(hp, g_ref[...], beta_ref[...], eps)
    out_ref[...] = jnp.where(y > 0, y, jnp.exp(y) - 1.0)                          # ELU(alpha=1)


def _graph_layer_mean_kernel(data_ref, wall_ref, ball_ref, asrc_ref, adstm_ref,
                             cnt_ref, g_ref, beta_ref, wlin_ref, blin_ref, out_ref,
                             *, alpha, H, hid, eps):
    outs = _attention_heads(data_ref[...], wall_ref[...], ball_ref[...],
                            asrc_ref[...], adstm_ref[...],
                            cnt_ref[...].astype(jnp.float32),
                            alpha=alpha, H=H, hid=hid)
    acc = outs[0]
    for o in outs[1:]:
        acc = acc + o
    xm = acc * (1.0 / H)                                                          # mean over heads
    # Dropout -> LayerNorm -> ReLU -> Linear  (Dropout is eval-mode identity)
    y = _layer_norm(xm, g_ref[...], beta_ref[...], eps)
    y = jnp.maximum(y, 0.0)
    out_ref[...] = lax.dot_general(y, wlin_ref[...], (((1,), (1,)), ((), ())),
                                   preferred_element_type=jnp.float32) + blin_ref[...]


# ----------------------------------------------------------------------------
# Host-side preparation (done once, outside the per-forward hot path)
# ----------------------------------------------------------------------------
def precompute_edge_counts(edges, num_of_nodes):
    """Dense edge-count matrix, built once per graph. bf16 is exact for counts <= 256
    and halves the dominant (N^2) DMA stream."""
    src, dst = edges[0], edges[1]
    cnt = jnp.zeros((num_of_nodes, num_of_nodes), jnp.float32).at[src, dst].add(1.0)
    return cnt.astype(jnp.bfloat16)


def prepare_params(params, *, hidden_features, num_of_heads):
    """Repack per-head weights into lane-dense, kernel-ready layouts (done once)."""
    H, hid = num_of_heads, hidden_features
    W = params["W"]                                 # (H, hid, F_in)
    fin = W.shape[-1]
    d_h = float(np.sqrt(hid * H))
    w_all = jnp.transpose(W, (2, 0, 1)).reshape(fin, H * hid)      # (F_in, H*hid)
    b_all = params["b"].reshape(1, H * hid)
    a_src = params["a_src"] / d_h                                  # (H, hid), 1/d_h folded
    a_dst = params["a_dst"] / d_h
    a_dst_mat = (jnp.eye(H, dtype=jnp.float32)[:, :, None] * a_dst[None, :, :]
                 ).reshape(H, H * hid)                             # block-diagonal rows
    return {
        "w_all": w_all, "b_all": b_all, "a_src": a_src, "a_dst_mat": a_dst_mat,
        "ln_g": params["ln_g"][None, :], "ln_b": params["ln_b"][None, :],
        "w_lin": params["W_lin"], "b_lin": params["b_lin"][None, :],
    }


def graph_layer_forward(cnt, data, kp, *, num_of_heads, hidden_features, alpha,
                        concat, eps=1e-6):
    """Full GraphLayer forward: one fused pallas_call (everything resident in VMEM)."""
    N = data.shape[0]
    H, hid = num_of_heads, hidden_features
    vmem = pl.BlockSpec(memory_space=pltpu.MemorySpace.VMEM)

    if concat:
        # torch's LayerNorm(hid) only broadcasts over (N, H*hid) when H == 1.
        assert H == 1, "concat=True requires num_of_heads == 1 (as in the PyTorch module)"
        kernel = functools.partial(_graph_layer_concat_kernel,
                                   alpha=alpha, H=H, hid=hid, eps=eps)
        args = (data, kp["w_all"], kp["b_all"], kp["a_src"], kp["a_dst_mat"], cnt,
                kp["ln_g"], kp["ln_b"])
        out_shape = jax.ShapeDtypeStruct((N, H * hid), jnp.float32)
    else:
        kernel = functools.partial(_graph_layer_mean_kernel,
                                   alpha=alpha, H=H, hid=hid, eps=eps)
        args = (data, kp["w_all"], kp["b_all"], kp["a_src"], kp["a_dst_mat"], cnt,
                kp["ln_g"], kp["ln_b"], kp["w_lin"], kp["b_lin"])
        out_shape = jax.ShapeDtypeStruct((N, kp["w_lin"].shape[0]), jnp.float32)

    # TODO(synk): for large N, switch to a flash-style grid over (row, key) blocks with
    # bf16 MXU operands, "parallel" row axis and a per-generation VMEM budget (v7x: 64 MiB).
    return pl.pallas_call(
        kernel,
        out_shape=out_shape,
        in_specs=[vmem] * len(args),
        out_specs=vmem,
    )(*args)


# ----------------------------------------------------------------------------
# Pure-numpy reference (mirrors the PyTorch module exactly)
# ----------------------------------------------------------------------------
def reference_forward(edges, data, params, *, num_of_nodes, hidden_features,
                      num_of_heads, alpha, concat, eps=1e-6):
    data = np.asarray(data, np.float32)
    src = np.asarray(edges[0])
    dst = np.asarray(edges[1])
    N = num_of_nodes
    d_h = np.sqrt(hidden_features * num_of_heads)
    outs = []
    for h in range(num_of_heads):
        W = np.asarray(params["W"][h]); b = np.asarray(params["b"][h])
        a_src = np.asarray(params["a_src"][h]); a_dst = np.asarray(params["a_dst"][h])
        x = data @ W.T + b
        logit = (x[src] * a_src).sum(-1) + (x[dst] * a_dst).sum(-1)
        lr = np.where(logit > 0, logit, alpha * logit)
        e = np.exp(lr / d_h)
        A = np.zeros((N, N), np.float64)
        np.add.at(A, (src, dst), e.astype(np.float64))
        rowsum = A.sum(-1, keepdims=True)
        zero = rowsum == 0
        rowsum[zero] = 1.0
        zidx = np.where(zero[:, 0])[0]
        A[zidx, zidx] += 1.0
        outs.append((A @ x) / rowsum)
    hp = np.concatenate(outs, 1) if concat else np.mean(np.stack(outs, 0), 0)
    mean = hp.mean(-1, keepdims=True)
    std = hp.std(-1, ddof=1, keepdims=True)
    y = np.asarray(params["ln_g"]) * (hp - mean) / (std + eps) + np.asarray(params["ln_b"])
    if concat:
        return np.where(y > 0, y, np.exp(y) - 1.0)
    y = np.maximum(y, 0.0)
    return y @ np.asarray(params["W_lin"]).T + np.asarray(params["b_lin"])


# ----------------------------------------------------------------------------
def make_params(key, *, in_features, hidden_features, out_features, num_of_heads):
    ks = jax.random.split(key, 6)
    bound = 1.0 / math.sqrt(in_features)
    W = jax.random.uniform(ks[0], (num_of_heads, hidden_features, in_features),
                           jnp.float32, -bound, bound)
    b = jax.random.uniform(ks[1], (num_of_heads, hidden_features),
                           jnp.float32, -bound, bound)
    a = jax.random.uniform(ks[2], (num_of_heads, 2 * hidden_features),
                           jnp.float32, 0.0, 1.0)       # torch.rand(1, 2*hid) per head
    W_lin = jax.random.uniform(ks[3], (out_features, hidden_features), jnp.float32,
                               -1.0 / math.sqrt(hidden_features),
                               1.0 / math.sqrt(hidden_features))
    b_lin = jax.random.uniform(ks[4], (out_features,), jnp.float32,
                               -1.0 / math.sqrt(hidden_features),
                               1.0 / math.sqrt(hidden_features))
    return {
        "W": W, "b": b,
        "a_src": a[:, :hidden_features], "a_dst": a[:, hidden_features:],
        "ln_g": jnp.ones((hidden_features,), jnp.float32),
        "ln_b": jnp.zeros((hidden_features,), jnp.float32),
        "W_lin": W_lin, "b_lin": b_lin,
    }


if __name__ == "__main__":
    key = jax.random.PRNGKey(0)
    N, F_IN, HID, F_OUT = 16, 8, 32, 16
    ALPHA = 0.2

    k_data, k_p2, k_p1 = jax.random.split(key, 3)
    data = jax.random.normal(k_data, (N, F_IN), jnp.float32)

    # edges over the first 10 "observed" nodes (fully connected, v_obs^2 edges);
    # nodes 10..15 are isolated and exercise the zero-rowsum self-loop path.
    v_obs = 10
    src = np.repeat(np.arange(v_obs), v_obs)
    dst = np.tile(np.arange(v_obs), v_obs)
    edges = jnp.asarray(np.stack([src, dst], axis=0), jnp.int32)   # (2, 100)

    # Dense edge-count matrix built ONCE per graph (outside the per-forward path).
    cnt = precompute_edge_counts(edges, N)

    # --- config A: concat=False, 2 heads (mean over heads + LN + ReLU + Linear) ---
    params2 = make_params(k_p2, in_features=F_IN, hidden_features=HID,
                          out_features=F_OUT, num_of_heads=2)
    kp2 = prepare_params(params2, hidden_features=HID, num_of_heads=2)
    out_a = graph_layer_forward(cnt, data, kp2, num_of_heads=2, hidden_features=HID,
                                alpha=ALPHA, concat=False)
    out_a = jax.block_until_ready(out_a)
    ref_a = reference_forward(edges, data, params2, num_of_nodes=N,
                              hidden_features=HID, num_of_heads=2,
                              alpha=ALPHA, concat=False)
    assert out_a.shape == (N, F_OUT)
    assert np.allclose(np.asarray(out_a), ref_a, rtol=2e-3, atol=2e-3)

    # --- config B: concat=True, 1 head (LN + ELU) ---
    params1 = make_params(k_p1, in_features=F_IN, hidden_features=HID,
                          out_features=F_OUT, num_of_heads=1)
    kp1 = prepare_params(params1, hidden_features=HID, num_of_heads=1)
    out_b = graph_layer_forward(cnt, data, kp1, num_of_heads=1, hidden_features=HID,
                                alpha=ALPHA, concat=True)
    out_b = jax.block_until_ready(out_b)
    ref_b = reference_forward(edges, data, params1, num_of_nodes=N,
                              hidden_features=HID, num_of_heads=1,
                              alpha=ALPHA, concat=True)
    assert out_b.shape == (N, HID)
    assert np.allclose(np.asarray(out_b), ref_b, rtol=2e-3, atol=2e-3)

    print("KERNEL_OK")
</pallas_src>

<mosaic_0001>
module attributes {stable_mosaic.version = 11 : i64} {
  func.func @_graph_layer_mean_kernel(%arg0: memref<16x8xf32, #tpu.memory_space<vmem>>, %arg1: memref<8x64xf32, #tpu.memory_space<vmem>>, %arg2: memref<1x64xf32, #tpu.memory_space<vmem>>, %arg3: memref<2x32xf32, #tpu.memory_space<vmem>>, %arg4: memref<2x64xf32, #tpu.memory_space<vmem>>, %arg5: memref<16x16xbf16, #tpu.memory_space<vmem>>, %arg6: memref<1x32xf32, #tpu.memory_space<vmem>>, %arg7: memref<1x32xf32, #tpu.memory_space<vmem>>, %arg8: memref<16x32xf32, #tpu.memory_space<vmem>>, %arg9: memref<1x16xf32, #tpu.memory_space<vmem>>, %arg10: memref<16x16xf32, #tpu.memory_space<vmem>>) attributes {dimension_semantics = [], scalar_prefetch = 0 : i64, scratch_operands = 0 : i64, tpu.core_type = #tpu.core_type<tc>} {
    %c0 = arith.constant 0 : index
    %c0_0 = arith.constant 0 : index
    %0 = vector.load %arg0[%c0, %c0_0] : memref<16x8xf32, #tpu.memory_space<vmem>>, vector<16x8xf32>
    %c0_1 = arith.constant 0 : index
    %c0_2 = arith.constant 0 : index
    %1 = vector.load %arg1[%c0_1, %c0_2] : memref<8x64xf32, #tpu.memory_space<vmem>>, vector<8x64xf32>
    %c0_3 = arith.constant 0 : index
    %c0_4 = arith.constant 0 : index
    %2 = vector.load %arg2[%c0_3, %c0_4] : memref<1x64xf32, #tpu.memory_space<vmem>>, vector<1x64xf32>
    %c0_5 = arith.constant 0 : index
    %c0_6 = arith.constant 0 : index
    %3 = vector.load %arg3[%c0_5, %c0_6] : memref<2x32xf32, #tpu.memory_space<vmem>>, vector<2x32xf32>
    %c0_7 = arith.constant 0 : index
    %c0_8 = arith.constant 0 : index
    %4 = vector.load %arg4[%c0_7, %c0_8] : memref<2x64xf32, #tpu.memory_space<vmem>>, vector<2x64xf32>
    %c0_9 = arith.constant 0 : index
    %c0_10 = arith.constant 0 : index
    %5 = vector.load %arg5[%c0_9, %c0_10] : memref<16x16xbf16, #tpu.memory_space<vmem>>, vector<16x16xbf16>
    %6 = arith.extf %5 : vector<16x16xbf16> to vector<16x16xf32>
    %cst = arith.constant dense<0.000000e+00> : vector<16x64xf32>
    %7 = tpu.matmul %0, %1, %cst {dimension_numbers = #tpu.dot_dimension_numbers<[1], [0], [0], [1], [0, 0, 1, 1], [], []>} : vector<16x8xf32>, vector<8x64xf32>, vector<16x64xf32> -> vector<16x64xf32>
    %8 = vector.broadcast %2 : vector<1x64xf32> to vector<16x64xf32>
    %9 = arith.addf %7, %8 : vector<16x64xf32>
    %cst_11 = arith.constant dense<0.000000e+00> : vector<2x16xf32>
    %10 = tpu.matmul %4, %9, %cst_11 {dimension_numbers = #tpu.dot_dimension_numbers<[1], [1], [0], [0], [0, 0, 1, 0], [], []>} : vector<2x64xf32>, vector<16x64xf32>, vector<2x16xf32> -> vector<2x16xf32>
    %11 = vector.extract_strided_slice %9 {offsets = [0, 0], sizes = [16, 32], strides = [1, 1]} : vector<16x64xf32> to vector<16x32xf32>
    %12 = vector.extract_strided_slice %3 {offsets = [0, 0], sizes = [1, 32], strides = [1, 1]} : vector<2x32xf32> to vector<1x32xf32>
    %13 = vector.broadcast %12 : vector<1x32xf32> to vector<16x32xf32>
    %14 = arith.mulf %11, %13 : vector<16x32xf32>
    %cst_12 = arith.constant dense<0.000000e+00> : vector<16xf32>
    %15 = vector.multi_reduction <add>, %14, %cst_12 [1] : vector<16x32xf32> to vector<16xf32>
    %16 = vector.shape_cast %15 : vector<16xf32> to vector<16x1xf32>
    %17 = vector.extract_strided_slice %10 {offsets = [0, 0], sizes = [1, 16], strides = [1, 1]} : vector<2x16xf32> to vector<1x16xf32>
    %18 = vector.broadcast %16 : vector<16x1xf32> to vector<16x16xf32>
    %19 = vector.broadcast %17 : vector<1x16xf32> to vector<16x16xf32>
    %20 = arith.addf %18, %19 : vector<16x16xf32>
    %cst_13 = arith.constant 0.000000e+00 : f32
    %21 = vector.broadcast %cst_13 : f32 to vector<16x16xf32>
    %22 = arith.cmpf ogt, %20, %21 : vector<16x16xf32>
    %cst_14 = arith.constant 2.000000e-01 : f32
    %23 = vector.broadcast %cst_14 : f32 to vector<16x16xf32>
    %24 = arith.mulf %23, %20 : vector<16x16xf32>
    %25 = arith.select %22, %20, %24 : vector<16x16xi1>, vector<16x16xf32>
    %26 = math.exp %25 : vector<16x16xf32>
    %27 = arith.mulf %6, %26 : vector<16x16xf32>
    %cst_15 = arith.constant dense<0.000000e+00> : vector<16xf32>
    %28 = vector.multi_reduction <add>, %27, %cst_15 [1] : vector<16x16xf32> to vector<16xf32>
    %29 = vector.shape_cast %28 : vector<16xf32> to vector<16x1xf32>
    %cst_16 = arith.constant 0.000000e+00 : f32
    %30 = vector.broadcast %cst_16 : f32 to vector<16x1xf32>
    %31 = arith.cmpf oeq, %29, %30 : vector<16x1xf32>
    %cst_17 = arith.constant dense<0.000000e+00> : vector<16x32xf32>
    %32 = tpu.matmul %27, %11, %cst_17 {dimension_numbers = #tpu.dot_dimension_numbers<[1], [0], [0], [1], [0, 0, 1, 1], [], []>} : vector<16x16xf32>, vector<16x32xf32>, vector<16x32xf32> -> vector<16x32xf32>
    %cst_18 = arith.constant 1.000000e+00 : f32
    %33 = vector.broadcast %cst_18 : f32 to vector<16x1xf32>
    %34 = arith.select %31, %33, %29 : vector<16x1xi1>, vector<16x1xf32>
    %35 = tpu.reciprocal %34 {approx = true} : vector<16x1xf32> -> vector<16x1xf32>
    %36 = arith.mulf %34, %35 : vector<16x1xf32>
    %cst_19 = arith.constant 2.000000e+00 : f32
    %37 = vector.broadcast %cst_19 : f32 to vector<16x1xf32>
    %38 = arith.subf %37, %36 : vector<16x1xf32>
    %39 = arith.mulf %35, %38 : vector<16x1xf32>
    %40 = vector.broadcast %39 : vector<16x1xf32> to vector<16x32xf32>
    %41 = arith.mulf %32, %40 : vector<16x32xf32>
    %42 = vector.shape_cast %31 : vector<16x1xi1> to vector<16x1xi1>
    %43 = vector.broadcast %42 : vector<16x1xi1> to vector<16x32xi1>
    %44 = arith.select %43, %11, %41 : vector<16x32xi1>, vector<16x32xf32>
    %45 = vector.extract_strided_slice %9 {offsets = [0, 32], sizes = [16, 32], strides = [1, 1]} : vector<16x64xf32> to vector<16x32xf32>
    %46 = vector.extract_strided_slice %3 {offsets = [1, 0], sizes = [1, 32], strides = [1, 1]} : vector<2x32xf32> to vector<1x32xf32>
    %47 = vector.broadcast %46 : vector<1x32xf32> to vector<16x32xf32>
    %48 = arith.mulf %45, %47 : vector<16x32xf32>
    %cst_20 = arith.constant dense<0.000000e+00> : vector<16xf32>
    %49 = vector.multi_reduction <add>, %48, %cst_20 [1] : vector<16x32xf32> to vector<16xf32>
    %50 = vector.shape_cast %49 : vector<16xf32> to vector<16x1xf32>
    %51 = vector.extract_strided_slice %10 {offsets = [1, 0], sizes = [1, 16], strides = [1, 1]} : vector<2x16xf32> to vector<1x16xf32>
    %52 = vector.broadcast %50 : vector<16x1xf32> to vector<16x16xf32>
    %53 = vector.broadcast %51 : vector<1x16xf32> to vector<16x16xf32>
    %54 = arith.addf %52, %53 : vector<16x16xf32>
    %cst_21 = arith.constant 0.000000e+00 : f32
    %55 = vector.broadcast %cst_21 : f32 to vector<16x16xf32>
    %56 = arith.cmpf ogt, %54, %55 : vector<16x16xf32>
    %cst_22 = arith.constant 2.000000e-01 : f32
    %57 = vector.broadcast %cst_22 : f32 to vector<16x16xf32>
    %58 = arith.mulf %57, %54 : vector<16x16xf32>
    %59 = arith.select %56, %54, %58 : vector<16x16xi1>, vector<16x16xf32>
    %60 = math.exp %59 : vector<16x16xf32>
    %61 = arith.mulf %6, %60 : vector<16x16xf32>
    %cst_23 = arith.constant dense<0.000000e+00> : vector<16xf32>
    %62 = vector.multi_reduction <add>, %61, %cst_23 [1] : vector<16x16xf32> to vector<16xf32>
    %63 = vector.shape_cast %62 : vector<16xf32> to vector<16x1xf32>
    %cst_24 = arith.constant 0.000000e+00 : f32
    %64 = vector.broadcast %cst_24 : f32 to vector<16x1xf32>
    %65 = arith.cmpf oeq, %63, %64 : vector<16x1xf32>
    %cst_25 = arith.constant dense<0.000000e+00> : vector<16x32xf32>
    %66 = tpu.matmul %61, %45, %cst_25 {dimension_numbers = #tpu.dot_dimension_numbers<[1], [0], [0], [1], [0, 0, 1, 1], [], []>} : vector<16x16xf32>, vector<16x32xf32>, vector<16x32xf32> -> vector<16x32xf32>
    %cst_26 = arith.constant 1.000000e+00 : f32
    %67 = vector.broadcast %cst_26 : f32 to vector<16x1xf32>
    %68 = arith.select %65, %67, %63 : vector<16x1xi1>, vector<16x1xf32>
    %69 = tpu.reciprocal %68 {approx = true} : vector<16x1xf32> -> vector<16x1xf32>
    %70 = arith.mulf %68, %69 : vector<16x1xf32>
    %cst_27 = arith.constant 2.000000e+00 : f32
    %71 = vector.broadcast %cst_27 : f32 to vector<16x1xf32>
    %72 = arith.subf %71, %70 : vector<16x1xf32>
    %73 = arith.mulf %69, %72 : vector<16x1xf32>
    %74 = vector.broadcast %73 : vector<16x1xf32> to vector<16x32xf32>
    %75 = arith.mulf %66, %74 : vector<16x32xf32>
    %76 = vector.shape_cast %65 : vector<16x1xi1> to vector<16x1xi1>
    %77 = vector.broadcast %76 : vector<16x1xi1> to vector<16x32xi1>
    %78 = arith.select %77, %45, %75 : vector<16x32xi1>, vector<16x32xf32>
    %79 = arith.addf %44, %78 : vector<16x32xf32>
    %cst_28 = arith.constant 5.000000e-01 : f32
    %80 = vector.broadcast %cst_28 : f32 to vector<16x32xf32>
    %81 = arith.mulf %79, %80 : vector<16x32xf32>
    %c0_29 = arith.constant 0 : index
    %c0_30 = arith.constant 0 : index
    %82 = vector.load %arg6[%c0_29, %c0_30] : memref<1x32xf32, #tpu.memory_space<vmem>>, vector<1x32xf32>
    %c0_31 = arith.constant 0 : index
    %c0_32 = arith.constant 0 : index
    %83 = vector.load %arg7[%c0_31, %c0_32] : memref<1x32xf32, #tpu.memory_space<vmem>>, vector<1x32xf32>
    %cst_33 = arith.constant dense<0.000000e+00> : vector<16xf32>
    %84 = vector.multi_reduction <add>, %81, %cst_33 [1] : vector<16x32xf32> to vector<16xf32>
    %85 = vector.shape_cast %84 : vector<16xf32> to vector<16x1xf32>
    %cst_34 = arith.constant 3.200000e+01 : f32
    %86 = vector.broadcast %cst_34 : f32 to vector<16x1xf32>
    %87 = arith.divf %85, %86 : vector<16x1xf32>
    %88 = vector.broadcast %87 : vector<16x1xf32> to vector<16x32xf32>
    %89 = arith.subf %81, %88 : vector<16x32xf32>
    %90 = arith.mulf %89, %89 : vector<16x32xf32>
    %cst_35 = arith.constant dense<0.000000e+00> : vector<16xf32>
    %91 = vector.multi_reduction <add>, %90, %cst_35 [1] : vector<16x32xf32> to vector<16xf32>
    %92 = vector.shape_cast %91 : vector<16xf32> to vector<16x1xf32>
    %cst_36 = arith.constant 0.0322580636 : f32
    %93 = vector.broadcast %cst_36 : f32 to vector<16x1xf32>
    %94 = arith.mulf %92, %93 : vector<16x1xf32>
    %95 = math.sqrt %94 : vector<16x1xf32>
    %cst_37 = arith.constant 9.99999997E-7 : f32
    %96 = vector.broadcast %cst_37 : f32 to vector<16x1xf32>
    %97 = arith.addf %95, %96 : vector<16x1xf32>
    %98 = tpu.reciprocal %97 {approx = true} : vector<16x1xf32> -> vector<16x1xf32>
    %99 = arith.mulf %97, %98 : vector<16x1xf32>
    %cst_38 = arith.constant 2.000000e+00 : f32
    %100 = vector.broadcast %cst_38 : f32 to vector<16x1xf32>
    %101 = arith.subf %100, %99 : vector<16x1xf32>
    %102 = arith.mulf %98, %101 : vector<16x1xf32>
    %103 = vector.broadcast %87 : vector<16x1xf32> to vector<16x32xf32>
    %104 = arith.subf %81, %103 : vector<16x32xf32>
    %105 = vector.broadcast %82 : vector<1x32xf32> to vector<16x32xf32>
    %106 = arith.mulf %105, %104 : vector<16x32xf32>
    %107 = vector.broadcast %102 : vector<16x1xf32> to vector<16x32xf32>
    %108 = arith.mulf %106, %107 : vector<16x32xf32>
    %109 = vector.broadcast %83 : vector<1x32xf32> to vector<16x32xf32>
    %110 = arith.addf %108, %109 : vector<16x32xf32>
    %cst_39 = arith.constant 0.000000e+00 : f32
    %111 = vector.broadcast %cst_39 : f32 to vector<16x32xf32>
    %112 = arith.maximumf %110, %111 : vector<16x32xf32>
    %c0_40 = arith.constant 0 : index
    %c0_41 = arith.constant 0 : index
    %113 = vector.load %arg8[%c0_40, %c0_41] : memref<16x32xf32, #tpu.memory_space<vmem>>, vector<16x32xf32>
    %cst_42 = arith.constant dense<0.000000e+00> : vector<16x16xf32>
    %114 = tpu.matmul %112, %113, %cst_42 {dimension_numbers = #tpu.dot_dimension_numbers<[1], [1], [0], [0], [0, 0, 1, 0], [], []>} : vector<16x32xf32>, vector<16x32xf32>, vector<16x16xf32> -> vector<16x16xf32>
    %c0_43 = arith.constant 0 : index
    %c0_44 = arith.constant 0 : index
    %115 = vector.load %arg9[%c0_43, %c0_44] : memref<1x16xf32, #tpu.memory_space<vmem>>, vector<1x16xf32>
    %116 = vector.broadcast %115 : vector<1x16xf32> to vector<16x16xf32>
    %117 = arith.addf %114, %116 : vector<16x16xf32>
    %c0_45 = arith.constant 0 : index
    %c0_46 = arith.constant 0 : index
    %118 = vector.load %arg10[%c0_45, %c0_46] : memref<16x16xf32, #tpu.memory_space<vmem>>, vector<16x16xf32>
    tpu.vector_store %arg10[%c0_45, %c0_46], %117 {strides = array<i32>} : memref<16x16xf32, #tpu.memory_space<vmem>>, vector<16x16xf32>,
    return
  }
}

</mosaic_0001>

<bundles_post_ra>
// kernel: tpu_custom_call.1
= control target key start
LH: loop header
LB: loop body
LE: loop exit
PB: predicated region body
PF: predicated region fallthrough
CT: control target
= control target key end

     0   :  { %vm52_vm0 = vcmask 64512   ;;  %v214_v3 = vlaneseq  ;;  %s1033_s0 = inlined_call_operand.vmem [shape: f32[16,8], index: 0, kind: input, shape index: {}]   ;;  %s1034_s1 = inlined_call_operand.vmem [shape: f32[8,64], index: 1, kind: input, shape index: {}]   ;;  %s1035_s2 = inlined_call_operand.vmem [shape: f32[1,64], index: 2, kind: input, shape index: {}]   ;;  %s1036_s3 = inlined_call_operand.vmem [shape: f32[2,32], index: 3, kind: input, shape index: {}]   ;;  %s1037_s4 = inlined_call_operand.vmem [shape: f32[2,64], index: 4, kind: input, shape index: {}]   ;;  %s1038_s5 = inlined_call_operand.vmem [shape: bf16[16,16], index: 5, kind: input, shape index: {}]   ;;  %s1039_s6 = inlined_call_operand.vmem [shape: f32[1,32], index: 6, kind: input, shape index: {}]   ;;  %s1040_s7 = inlined_call_operand.vmem [shape: f32[1,32], index: 7, kind: input, shape index: {}]   ;;  %s1041_s8 = inlined_call_operand.vmem [shape: f32[16,32], index: 8, kind: input, shape index: {}]   ;;  %s1042_s9 = inlined_call_operand.vmem [shape: f32[1,16], index: 9, kind: input, shape index: {}]   ;;  %s1043_s10 = inlined_call_operand.hbm [shape: f32[16,16], index: 10, kind: output, shape index: {}]  }
   0x1   :  { %v38_v0 = vld [vmem:[%s1034_s1] sm:$0xff]  ;;  %v37_v2 = vld [vmem:[%s1033_s0 + $0x8] sm:$0xff] }
   0x2   :  { %v36_v1 = vld [vmem:[%s1033_s0] sm:$0xff]  ;;  %748 = vmatprep.subr.mxu0 %v38_v0 }
   0x3   :  { %750 = vmatprep.mubr.msk.f32.mxu0 %vm52_vm0, %v36_v1 }
   0x4   :  { %15 = vsyncpa [#allocation3], 0  ;;  %749 = vmatpush3.msra.mxu0 %v38_v0  ;;  %v932_v4 = vshrl.u32 %v214_v3, 7  ;;  %v40_v5 = vld [vmem:[%s1036_s3] sm:$0x3]  ;;  %s860_s1 = smov 32  }
   0x5   :  { %751 = vmatmul.mubr.msk.f32.vlgmr.msra.gmra.mrb[0].mxu0 %vm52_vm0, %v37_v2  ;;  %v861_v8 = vmov 0.0|0.0   ;;  %vm862_vm1 = vmmov 0   ;;  %v863_v9 = vmov 0.0   ;;  %v709_v10 = vld [vmem:[%s1035_s2] ss:$0 sm:$0xff]  ;;  %vm134_vm2 = vcmask 523264  }
   0x6   :  { %v355_v6 = vsub.s32 1, %v932_v4  ;;  %781 = vmatprep.subr.bf16.mxu1 %v861_v8  ;;  %757 = vmatprep.mubr.msk.f32.mxu1 %vm862_vm1, %v863_v9  ;;  %vm783_vm3 = vmpackc.low %vm134_vm2, %vm134_vm2  ;;  %s864_s3 = smov 96   ;;  %v41_v19 = vld [vmem:[%s1037_s4] sm:$0x3]  ;;  %v216_v20 = vsub.s32 0, %v932_v4  ;;  %vm220_vm4 = vcmask 261120  }
   0x7   :  { %v727_v44 = vld [vmem:[%s1038_s5] sm:$0xff]   ;;  %vm245_vm7 = vcmask 130048   ;;  %vm794_vm14 = vmpackc.low %vm220_vm4, %vm220_vm4  ;;  %s865_s11 = smov [#allocation2]  }
   0x8   :  { %v356_v7 = vrot.slane %v40_v5, %v355_v6  ;;  %v217_v21 = vrot.slane %v40_v5, %v216_v20  ;;  %v728_v45 = vunpack.c.l.bf16 %v727_v44  ;;  %v729_v46 = vunpack.c.h.bf16 %v727_v44  ;;  %s698_s12 = sshll.u32 %s865_s11, 4  ;;  %s699_s12 = int_to_ptr.vmem [resolvable:$true] %s698_s12 }
   0x9   :  { %p841_p1 = scmp.lt.s32.totalorder %s699_s12, %s699_s12 }
   0xa   :  { %358 = vrot.lane.b32.xlu0 %v356_v7, %s860_s1 }
  0x7c   :  { %v359_v12 = vpop.permute.xlu0 %358 }
  0xd8   :  { %v752_v11 = vpop.f32.mrb[0].mxu0 }
  0xd9   :  { %v944_v13 = vadd.f32 %v752_v11, %v709_v10  ;;  %v125_v14 = vpop.f32.mrb[1].mxu0 }
  0xda   :  { %v946_v15 = vadd.f32 %v709_v10, %v125_v14 }
  0xdb   :  { %v362_v16 = vmul.f32 %v359_v12, %v944_v13  ;;  %v219_v22 = vmul.f32 %v217_v21, %v944_v13 }
  0xdc   :  { %v361_v17 = vmul.f32 %v359_v12, %v946_v15  ;;  %v782_v18 = vpack.c.bf16 %v944_v13, %v946_v15  ;;  %v218_v24 = vmul.f32 %v217_v21, %v946_v15  ;;  %v807_v30 = vpack.i.bf16 %v944_v13, %v946_v15 }
  0xdd   :  { %367 = vrot.lane.b32.xlu1 %v362_v16, %s864_s3  ;;  %v224_v23 = vsel %vm220_vm4, %v219_v22, 0.0 }
  0xde   :  { %365 = vrot.lane.b32.xlu0 %v361_v17, %s864_s3  ;;  %784 = vmatpush3.bf16.xpose.msk.msra.mxu1 %vm783_vm3, %v782_v18  ;;  %v221_v25 = vsel %vm220_vm4, %v218_v24, 0.0 }
  0xdf   :  { %786 = vmatprep.subr.bf16.mxu0 %v782_v18 }
  0xe0   :  { %788 = vmatpush3.bf16.msra.mxu0 %v782_v18 }
  0xe5   :  { %758 = vmatmul.mubr.msk.f32.vlgmr.msra.gmra.mrb[0].mxu1 %vm134_vm2, %v41_v19 }
  0xfd   :  { %225 = vadd.xlane.f32.xlu0 %v224_v23 }
 0x101   :  { %222 = vadd.xlane.f32.xlu1 %v221_v25 }
 0x14f   :  { %v368_v26 = vpop.permute.xlu1 %367 }
 0x150   :  { %v366_v27 = vpop.permute.xlu0 %365  ;;  %v374_v28 = vsel %vm220_vm4, %v368_v26, 0.0 }
 0x151   :  { %375 = vadd.xlane.f32.xlu1 %v374_v28  ;;  %v371_v29 = vsel %vm220_vm4, %v366_v27, 0.0 }
 0x152   :  { %372 = vadd.xlane.f32.xlu0 %v371_v29 }
 0x168   :  { %808 = vrot.lane.b32.xlu0 %v807_v30, %s864_s3 }
 0x18a   :  { %v226_v34 = vpop.xlane.xlu0 %225 }
 0x18e   :  { %v223_v35 = vpop.xlane.xlu1 %222 }
 0x1b8   :  { %v210_v31 = vpop.f32.mrb[0].mxu1 }
 0x1b9   :  { %v230_v32 = vrot.slane %v210_v31, %v216_v20  ;;  %v759_v33 = vpop.f32.mrb[1].mxu1  ;;  %v380_v51 = vrot.slane %v210_v31, %v355_v6 }
 0x1bb   :  { %v231_v36 = vadd.f32 %v230_v32, %v223_v35  ;;  %v232_v37 = vadd.f32 %v230_v32, %v226_v34 }
 0x1bd   :  { %vm233_vm5 = vcmp.gt.f32.partialorder %v231_v36, 0.0  ;;  %vm234_vm6 = vcmp.gt.f32.partialorder %v232_v37, 0.0  ;;  %v235_v38 = vmul.f32 0.2, %v231_v36  ;;  %v236_v39 = vmul.f32 0.2, %v232_v37 }
 0x1bf   :  { %v237_v40 = vsel %vm233_vm5, %v231_v36, %v235_v38  ;;  %v238_v41 = vsel %vm234_vm6, %v232_v37, %v236_v39 }
 0x1c0   :  { %v239_v42 = vmul.f32 1.442695, %v237_v40  ;;  %v241_v43 = vmul.f32 1.442695, %v238_v41 }
 0x1c2   :  { %812 = vpow2.f32 %v239_v42 }
 0x1c3   :  { %814 = vpow2.f32 %v241_v43 }
 0x1cc   :  { %v813_v47 = vpop.eup %812 }
 0x1cd   :  { %v815_v48 = vpop.eup %814  ;;  %v243_v49 = vmul.f32 %v813_v47, %v728_v45 }
 0x1ce   :  { %v244_v50 = vmul.f32 %v815_v48, %v729_v46 }
 0x1cf   :  { %764 = vmatprep.mubr.msk.f32.mxu0 %vm245_vm7, %v243_v49  ;;  %v246_v28 = vsel %vm245_vm7, %v243_v49, 0.0 }
 0x1d0   :  { %765 = vmatmul.mubr.msk.f32.vlgmr.msra.gmra.mrb[2].mxu0 %vm245_vm7, %v244_v50  ;;  %v249_v29 = vsel %vm245_vm7, %v244_v50, 0.0 }
 0x1de   :  { %v376_v52 = vpop.xlane.xlu1 %375 }
 0x1df   :  { %v382_v53 = vadd.f32 %v380_v51, %v376_v52  ;;  %v373_v54 = vpop.xlane.xlu0 %372 }
 0x1e0   :  { %v381_v55 = vadd.f32 %v380_v51, %v373_v54 }
 0x1e1   :  { %vm384_vm8 = vcmp.gt.f32.partialorder %v382_v53, 0.0  ;;  %v386_v56 = vmul.f32 0.2, %v382_v53 }
 0x1e2   :  { %vm383_vm9 = vcmp.gt.f32.partialorder %v381_v55, 0.0  ;;  %v385_v57 = vmul.f32 0.2, %v381_v55 }
 0x1e3   :  { %v388_v58 = vsel %vm384_vm8, %v382_v53, %v386_v56  ;;  %v809_v59 = vpop.permute.xlu0 %808 }
 0x1e4   :  { %v391_v60 = vmul.f32 1.442695, %v388_v58  ;;  %v387_v61 = vsel %vm383_vm9, %v381_v55, %v385_v57  ;;  %v811_v62 = vunpack.i.h.bf16 %v809_v59  ;;  %v810_v63 = vunpack.i.l.bf16 %v809_v59 }
 0x1e5   :  { %v389_v0 = vmul.f32 1.442695, %v387_v61 }
 0x1e6   :  { %816 = vpow2.f32 %v391_v60  ;;  %v789_v1 = vpack.c.bf16 %v811_v62, %v810_v63 }
 0x1e7   :  { %818 = vpow2.f32 %v389_v0 }
 0x1e8   :  { %790 = vmatprep.subr.bf16.mxu0 %v789_v1 }
 0x1e9   :  { %792 = vmatpush3.bf16.msra.mxu0 %v789_v1 }
 0x1f0   :  { %v817_v2 = vpop.eup %816 }
 0x1f1   :  { %v819_v3 = vpop.eup %818  ;;  %v394_v5 = vmul.f32 %v817_v2, %v729_v46  ;;  %v595_v2 = vld [vmem:[%s1041_s8] sm:$0xff] }
 0x1f2   :  { %v393_v4 = vmul.f32 %v819_v3, %v728_v45  ;;  %v596_v3 = vld [vmem:[%s1041_s8 + $0x8] sm:$0xff] }
 0x1f3   :  { %v398_v7 = vsel %vm245_vm7, %v394_v5, 0.0 }
 0x1f4   :  { %771 = vmatprep.mubr.msk.f32.mxu0 %vm245_vm7, %v393_v4  ;;  %v395_v6 = vsel %vm245_vm7, %v393_v4, 0.0  ;;  %v793_v4 = vpack.c.bf16 %v596_v3, %v595_v2 }
 0x1f5   :  { %396 = vadd.xlane.f32.xlu1 %v395_v6  ;;  %772 = vmatmul.mubr.msk.f32.vlgmr.msra.gmra.mrb[4].mxu0 %vm245_vm7, %v394_v5 }
 0x1f6   :  { %795 = vmatprep.subr.msk.bf16.mxu1 %vm794_vm14, %v793_v4 }
 0x1f7   :  { %798 = vmatpush3.bf16.xpose.msk.msra.mxu1 %vm794_vm14, %v793_v4 }
 0x1f9   :  { %399 = vadd.xlane.f32.xlu1 %v398_v7 }
 0x282   :  { %v397_v8 = vpop.xlane.xlu1 %396 }
 0x283   :  { %vm401_vm11 = vcmp.eq.f32.partialorder %v397_v8, 0.0 }
 0x284   :  { %v490_v14 = vsel %vm401_vm11, 1.0, %v397_v8 }
 0x286   :  { %v400_v11 = vpop.xlane.xlu1 %399 }
 0x287   :  { %vm402_vm10 = vcmp.eq.f32.partialorder %v400_v11, 0.0 }
 0x288   :  { %v491_v12 = vsel %vm402_vm10, 1.0, %v400_v11 }
 0x289   :  { %820 = vrcp.f32 %v491_v12 }
 0x28a   :  { %822 = vrcp.f32 %v490_v14 }
 0x293   :  { %v821_v16 = vpop.eup %820 }
 0x294   :  { %v823_v17 = vpop.eup %822  ;;  %v495_v18 = vmul.f32 %v821_v16, %v491_v12 }
 0x295   :  { %v494_v19 = vmul.f32 %v823_v17, %v490_v14 }
 0x296   :  { %v497_v20 = vsub.f32 2.0, %v495_v18 }
 0x297   :  { %v496_v21 = vsub.f32 2.0, %v494_v19 }
 0x298   :  { %v499_v22 = vmul.f32 %v821_v16, %v497_v20 }
 0x299   :  { %v498_v24 = vmul.f32 %v823_v17, %v496_v21 }
 0x2a3   :  { %v766_v9 = vpop.f32.mrb[2].mxu0 }
 0x2a4   :  { %v326_v10 = vpop.f32.mrb[3].mxu0 }
 0x2c8   :  { %v773_v23 = vpop.f32.mrb[4].mxu0 }
 0x2c9   :  { %v501_v25 = vmul.f32 %v773_v23, %v499_v22  ;;  %v481_v26 = vpop.f32.mrb[5].mxu0 }
 0x2ca   :  { %v500_v27 = vmul.f32 %v498_v24, %v481_v26 }
 0x2cb   :  { %510 = vrot.lane.b32.xlu0 %v501_v25, %s860_s1  ;;  %v719_v25 = vld [vmem:[%s1039_s6] ss:$0 sm:$0xff] }
 0x2cc   :  { %508 = vrot.lane.b32.xlu1 %v500_v27, %s860_s1 }
 0x2ea   :  { %247 = vadd.xlane.f32.xlu0 %v246_v28 }
 0x2f0   :  { %250 = vadd.xlane.f32.xlu1 %v249_v29 }
 0x33d   :  { %v511_v30 = vpop.permute.xlu0 %510 }
 0x33e   :  { %v509_v31 = vpop.permute.xlu1 %508  ;;  %v515_v32 = vsel %vm402_vm10, %v944_v13, %v511_v30 }
 0x33f   :  { %520 = vrot.lane.b32.xlu1 %v515_v32, %s864_s3  ;;  %v514_v33 = vsel %vm401_vm11, %v946_v15, %v509_v31  ;;  %v720_v31 = vld [vmem:[%s1040_s7] ss:$0 sm:$0xff]  ;;  %s836_s7 = scalar_lea.vmem %s699_s12, 256 }
 0x340   :  { %518 = vrot.lane.b32.xlu0 %v514_v33, %s864_s3  ;;  %p837_p0 = scmp.ne.s32.totalorder %s699_s12, %s836_s7  ;;  %p842_p2 = scmp.lt.s32.totalorder %s836_s7, %s836_s7 }
 0x342   :  { %p843_p3 = por %p842_p2, %p841_p1 }
 0x344   :  { %p844_p4 = pnand %p843_p3, %p837_p0 }
 0x377   :  { %v248_v35 = vpop.xlane.xlu0 %247 }
 0x378   :  { %vm252_vm13 = vcmp.eq.f32.partialorder %v248_v35, 0.0 }
 0x379   :  { %v335_v37 = vsel %vm252_vm13, 1.0, %v248_v35 }
 0x37d   :  { %v251_v34 = vpop.xlane.xlu1 %250 }
 0x37e   :  { %vm253_vm12 = vcmp.eq.f32.partialorder %v251_v34, 0.0 }
 0x37f   :  { %v336_v36 = vsel %vm253_vm12, 1.0, %v251_v34 }
 0x380   :  { %824 = vrcp.f32 %v336_v36 }
 0x381   :  { %826 = vrcp.f32 %v335_v37 }
 0x38a   :  { %v825_v38 = vpop.eup %824 }
 0x38b   :  { %v827_v39 = vpop.eup %826  ;;  %v340_v40 = vmul.f32 %v825_v38, %v336_v36 }
 0x38c   :  { %v339_v41 = vmul.f32 %v827_v39, %v335_v37 }
 0x38d   :  { %v342_v42 = vsub.f32 2.0, %v340_v40 }
 0x38e   :  { %v341_v43 = vsub.f32 2.0, %v339_v41  ;;  %v721_v41 = vld [vmem:[%s1042_s9] ss:$0 sm:$0xff] }
 0x38f   :  { %v344_v44 = vmul.f32 %v825_v38, %v342_v42 }
 0x390   :  { %v343_v45 = vmul.f32 %v827_v39, %v341_v43 }
 0x391   :  { %v346_v46 = vmul.f32 %v766_v9, %v344_v44 }
 0x392   :  { %v345_v47 = vmul.f32 %v343_v45, %v326_v10 }
 0x393   :  { %v352_v48 = vsel %vm253_vm12, %v944_v13, %v346_v46 }
 0x394   :  { %v351_v51 = vsel %vm252_vm13, %v946_v15, %v345_v47 }
 0x3b1   :  { %v521_v49 = vpop.permute.xlu1 %520 }
 0x3b2   :  { %v525_v50 = vadd.f32 %v521_v49, %v352_v48  ;;  %v519_v52 = vpop.permute.xlu0 %518 }
 0x3b3   :  { %v524_v53 = vadd.f32 %v519_v52, %v351_v51 }
 0x3b4   :  { %v527_v54 = vmul.f32 0.5, %v525_v50 }
 0x3b5   :  { %v526_v55 = vmul.f32 0.5, %v524_v53 }
 0x3b6   :  { %v533_v56 = vsel %vm220_vm4, %v527_v54, 0.0 }
 0x3b7   :  { %534 = vadd.xlane.f32.xlu1 %v533_v56  ;;  %v530_v57 = vsel %vm220_vm4, %v526_v55, 0.0 }
 0x3b8   :  { %531 = vadd.xlane.f32.xlu0 %v530_v57 }
 0x444   :  { %v535_v58 = vpop.xlane.xlu1 %534 }
 0x445   :  { %v538_v59 = vmul.f32 0.03125, %v535_v58  ;;  %v532_v60 = vpop.xlane.xlu0 %531 }
 0x446   :  { %v537_v61 = vmul.f32 0.03125, %v532_v60 }
 0x447   :  { %v540_v13 = vsub.f32 %v527_v54, %v538_v59 }
 0x448   :  { %v539_v62 = vsub.f32 %v526_v55, %v537_v61 }
 0x449   :  { %v542_v15 = vmul.f32 %v540_v13, %v540_v13  ;;  %v582_v34 = vmul.f32 %v719_v25, %v540_v13 }
 0x44a   :  { %v541_v63 = vmul.f32 %v539_v62, %v539_v62  ;;  %v581_v28 = vmul.f32 %v719_v25, %v539_v62 }
 0x44b   :  { %v546_v1 = vsel %vm220_vm4, %v542_v15, 0.0 }
 0x44c   :  { %v543_v0 = vsel %vm220_vm4, %v541_v63, 0.0 }
 0x44d   :  { %544 = vadd.xlane.f32.xlu0 %v543_v0 }
 0x451   :  { %547 = vadd.xlane.f32.xlu0 %v546_v1 }
 0x4da   :  { %v545_v5 = vpop.xlane.xlu0 %544 }
 0x4db   :  { %v549_v6 = vmul.f32 0.032258064, %v545_v5 }
 0x4dd   :  { %828 = vrsqrt.f32 %v549_v6  ;;  %vm553_vm15 = vcmp.eq.f32.partialorder %v549_v6, inf  ;;  %v556_v11 = vand.u32 2147483648, %v549_v6  ;;  %vm555_vm0 = vcmp.eq.f32.partialorder %v549_v6, 0.0 }
 0x4de   :  { %v548_v7 = vpop.xlane.xlu0 %547 }
 0x4df   :  { %v550_v8 = vmul.f32 0.032258064, %v548_v7 }
 0x4e1   :  { %830 = vrsqrt.f32 %v550_v8  ;;  %vm560_vm1 = vcmp.eq.f32.partialorder %v550_v8, inf  ;;  %v563_v19 = vand.u32 2147483648, %v550_v8  ;;  %vm562_vm2 = vcmp.eq.f32.partialorder %v550_v8, 0.0 }
 0x4e7   :  { %v829_v9 = vpop.eup %828 }
 0x4e8   :  { %v552_v10 = vmul.f32 %v829_v9, %v549_v6 }
 0x4ea   :  { %v554_v12 = vsel %vm553_vm15, %v549_v6, %v552_v10 }
 0x4eb   :  { %v831_v14 = vpop.eup %830  ;;  %v557_v16 = vsel %vm555_vm0, %v556_v11, %v554_v12 }
 0x4ec   :  { %v559_v17 = vmul.f32 %v831_v14, %v550_v8  ;;  %v565_v18 = vadd.f32 1e-06, %v557_v16 }
 0x4ee   :  { %v561_v20 = vsel %vm560_vm1, %v550_v8, %v559_v17  ;;  %832 = vrcp.f32 %v565_v18 }
 0x4ef   :  { %v564_v21 = vsel %vm562_vm2, %v563_v19, %v561_v20 }
 0x4f0   :  { %v566_v22 = vadd.f32 1e-06, %v564_v21 }
 0x4f2   :  { %834 = vrcp.f32 %v566_v22 }
 0x4f8   :  { %v833_v23 = vpop.eup %832 }
 0x4f9   :  { %v569_v24 = vmul.f32 %v833_v23, %v565_v18 }
 0x4fb   :  { %v571_v26 = vsub.f32 2.0, %v569_v24 }
 0x4fc   :  { %v835_v27 = vpop.eup %834 }
 0x4fd   :  { %v570_v29 = vmul.f32 %v835_v27, %v566_v22  ;;  %v573_v30 = vmul.f32 %v833_v23, %v571_v26 }
 0x4ff   :  { %v572_v32 = vsub.f32 2.0, %v570_v29  ;;  %v583_v33 = vmul.f32 %v581_v28, %v573_v30 }
 0x501   :  { %v574_v35 = vmul.f32 %v835_v27, %v572_v32  ;;  %v591_v36 = vadd.f32 %v720_v31, %v583_v33 }
 0x503   :  { %v584_v37 = vmul.f32 %v582_v34, %v574_v35  ;;  %v593_v38 = vmax.f32 %v591_v36, 0.0 }
 0x505   :  { %v592_v39 = vadd.f32 %v720_v31, %v584_v37  ;;  %778 = vmatprep.mubr.msk.f32.mxu1 %vm220_vm4, %v593_v38 }
 0x507   :  { %v594_v40 = vmax.f32 %v592_v39, 0.0 }
 0x509   :  { %779 = vmatmul.mubr.msk.f32.vlgmr.msra.gmra.mrb[2].mxu1 %vm220_vm4, %v594_v40 }
 0x5dc   :  { %v780_v42 = vpop.f32.mrb[2].mxu1 }
 0x5dd   :  { %v688_v43 = vadd.f32 %v780_v42, %v721_v41  ;;  %v682_v44 = vpop.f32.mrb[3].mxu1 }
 0x5de   :  { %v683_v45 = vadd.f32 %v721_v41, %v682_v44 }
 0x5df   :  { %692 = vst.msk [vmem:[#allocation2 + $0x8] sm:$0xff] %vm245_vm7, %v688_v43 }
 0x5e0   :  { %691 = vst.msk [vmem:[#allocation2] sm:$0xff] %vm245_vm7, %v683_v45 }
 0x5e1   :  { %847 = shalt.err (!%p844_p4)
}
 0x5e2   :  { %s848_s14 = scalar_lea.hbm %s1043_s10, 256 }
 0x5e3   :  { %p849_p5 = scmp.ne.s32.totalorder %s1043_s10, %s848_s14  ;;  %p852_p6 = scmp.lt.u32.totalorder %s848_s14, %s1043_s10 }
 0x5e5   :  { %p854_p7 = pnand %p852_p6, %p849_p5 }
 0x5e7   :  { %857 = shalt.err (!%p854_p7)
}
 0x5e8   :  { %s866_s19 = smov 128   ;;  %s867_s20 = smov 8  }
 0x5e9   :  { %704 = dma.vmem_to_hbm [thread:$0]  %s699_s12, 256, %s1043_s10, [#allocation3], %s866_s19, %s866_s19, %s867_s20  }
 0x5ea   :  { %858 = dma.done.wait [#allocation3], 256  }
 0x5eb   :  { %859 = vsyncadd [#allocation3], 4294967040 }
 0x5ec   :  { %708 = vsyncpa [#allocation3], 1 }

</bundles_post_ra>
